<compile_context>
chip_gen: v5e
topology: v5e:2x2
jax: 0.10.0
libtpu: 0.0.40
codegen_flags: <defaults>
</compile_context>

<pallas_src>
import jax
import jax.numpy as jnp
from jax.experimental import pallas as pl
from jax.experimental.pallas import tpu as pltpu


def _round_up(x: int, m: int) -> int:
    return (x + m - 1) // m * m


def node_encoder_kernel(x_ref, w_ref, b_ref, o_ref):
    # x_ref: (tile_n, d_in), w_ref: (d_in, d_out), b_ref: (1, d_out) f32,
    # o_ref: (tile_n, d_out).  MXU matmul with f32 accumulation + f32 bias add.
    acc = jnp.dot(x_ref[...], w_ref[...], preferred_element_type=jnp.float32)
    o_ref[...] = (acc + b_ref[...]).astype(o_ref.dtype)


def _vmem_cap_bytes() -> int:
    # Generation-aware cap: 75% of physical per-core VMEM; conservative 48 MiB
    # fallback (safe on v5e/v6e 128 MiB and v7x 64 MiB).
    try:
        info = pltpu.get_tpu_info()
        cap = getattr(info, "vmem_capacity_bytes", None)
        if cap:
            return int(cap * 3 // 4)
    except Exception:
        pass
    return 48 << 20


def node_encoder(x, weight_t, bias, *, tile_n=2048, use_bf16=True):
    """y = x @ weight_t + bias   (equivalent to torch nn.Linear forward).

    x: [N, input_dim], weight_t: [input_dim, embedding_dim], bias: [embedding_dim].
    Output dtype matches the input x dtype; MXU accumulation is always f32.
    """
    n, d_in = x.shape
    d_in_w, d_out = weight_t.shape
    assert d_in == d_in_w, (d_in, d_in_w)
    assert bias.shape == (d_out,), bias.shape

    out_dtype = x.dtype
    if use_bf16:
        # bf16 operands for the MXU; accumulation / bias / epilogue stay f32.
        if x.dtype != jnp.bfloat16:
            x = x.astype(jnp.bfloat16)
        if weight_t.dtype != jnp.bfloat16:
            weight_t = weight_t.astype(jnp.bfloat16)
    bias2d = bias.astype(jnp.float32).reshape(1, d_out)

    # ---- Row tiling: single step for small N, big tiles for large N ----
    if n <= tile_n:
        tile_n = n                       # single block == full dim, always legal
    else:
        tile_n = max(512, _round_up(tile_n, 512))
    num_tiles = pl.cdiv(n, tile_n)

    # ---- VMEM budget: double-buffered x/out tiles + resident weight/bias ----
    x_item = jnp.dtype(x.dtype).itemsize
    w_item = jnp.dtype(weight_t.dtype).itemsize
    o_item = jnp.dtype(out_dtype).itemsize
    per_step_bytes = (
        2 * tile_n * d_in * x_item        # x tile, double-buffered
        + 2 * tile_n * d_out * o_item     # out tile, double-buffered
        + d_in * d_out * w_item           # weight, single-buffered (resident)
        + d_out * 4                       # bias (f32), single-buffered
    )
    vmem_limit = int(min(max(2 * per_step_bytes + (2 << 20), 32 << 20),
                         _vmem_cap_bytes()))

    cost = pl.CostEstimate(
        flops=2 * n * d_in * d_out,
        transcendentals=0,
        bytes_accessed=(n * d_in * x_item
                        + n * d_out * o_item
                        + d_in * d_out * w_item
                        + d_out * 4),
    )

    return pl.pallas_call(
        node_encoder_kernel,
        out_shape=jax.ShapeDtypeStruct((n, d_out), out_dtype),
        grid_spec=pl.GridSpec(
            grid=(num_tiles,),
            in_specs=[
                # x rows: streamed / double-buffered per grid step.
                pl.BlockSpec((tile_n, d_in), lambda i: (i, 0)),
                # weight + bias: constant index_map -> VMEM-resident; single
                # buffer is enough since they never change across steps.
                pl.BlockSpec((d_in, d_out), lambda i: (0, 0),
                             pipeline_mode=pl.Buffered(1)),
                pl.BlockSpec((1, d_out), lambda i: (0, 0),
                             pipeline_mode=pl.Buffered(1)),
            ],
            out_specs=pl.BlockSpec((tile_n, d_out), lambda i: (i, 0)),
        ),
        compiler_params=pltpu.CompilerParams(
            # Row axis is embarrassingly parallel: sharded across the 2 TCs on
            # v7x (each TC fetches its own small weight copy -- negligible at
            # this weight size); harmless on single-TC v5e/v6e.
            dimension_semantics=("parallel",),
            vmem_limit_bytes=vmem_limit,
        ),
        cost_estimate=cost,
    )(x, weight_t, bias2d)


if __name__ == "__main__":
    # Small shapes consistent with the module's forward: x [num_nodes, input_dim].
    num_nodes = 1000
    input_dim = 32
    embedding_dim = 64

    key = jax.random.PRNGKey(0)
    kx, kw, kb = jax.random.split(key, 3)

    x = jax.random.normal(kx, (num_nodes, input_dim), dtype=jnp.float32)
    # nn.Linear stores weight as (out, in); we pass it pre-transposed (in, out).
    weight = jax.random.normal(kw, (embedding_dim, input_dim), dtype=jnp.float32) * 0.1
    bias = jax.random.normal(kb, (embedding_dim,), dtype=jnp.float32) * 0.1
    weight_t = weight.T  # (input_dim, embedding_dim)

    fn = jax.jit(lambda a, w, b: node_encoder(a, w, b))
    out = fn(x, weight_t, bias)
    jax.block_until_ready(out)

    assert out.shape == (num_nodes, embedding_dim)
    assert out.dtype == x.dtype

    # Reference matching the kernel's bf16-operand / f32-accumulate math.
    ref_bf16 = (
        jnp.dot(x.astype(jnp.bfloat16), weight_t.astype(jnp.bfloat16),
                preferred_element_type=jnp.float32)
        + bias[None, :]
    )
    assert jnp.allclose(out, ref_bf16, atol=1e-3, rtol=1e-3)

    # Loose check against the pure-f32 torch-equivalent reference (bf16 inputs
    # introduce ~1e-2-scale absolute differences at these magnitudes).
    ref_f32 = x @ weight_t + bias[None, :]
    assert jnp.allclose(out, ref_f32, atol=5e-2, rtol=5e-2)

    print("KERNEL_OK")
</pallas_src>

<mosaic_0001>
module attributes {stable_mosaic.version = 11 : i64} {
  func.func @node_encoder_kernel(%arg0: i32, %arg1: memref<1000x32xbf16, #tpu.memory_space<vmem>>, %arg2: memref<32x64xbf16, #tpu.memory_space<vmem>>, %arg3: memref<1x64xf32, #tpu.memory_space<vmem>>, %arg4: memref<1000x64xf32, #tpu.memory_space<vmem>>) attributes {dimension_semantics = [#tpu.dimension_semantics<parallel>], iteration_bounds = array<i64: 1>, scalar_prefetch = 0 : i64, scratch_operands = 0 : i64, tpu.core_type = #tpu.core_type<tc>, window_params = [{transform_indices = @transform_0, window_bounds = array<i64: 1000, 32>}, {pipeline_mode = #tpu.pipeline_mode<synchronous>, transform_indices = @transform_1, window_bounds = array<i64: 32, 64>}, {pipeline_mode = #tpu.pipeline_mode<synchronous>, transform_indices = @transform_2, window_bounds = array<i64: 1, 64>}, {transform_indices = @transform_3, window_bounds = array<i64: 1000, 64>}]} {
    %c0 = arith.constant 0 : index
    %c0_0 = arith.constant 0 : index
    %0 = vector.load %arg1[%c0, %c0_0] : memref<1000x32xbf16, #tpu.memory_space<vmem>>, vector<1000x32xbf16>
    %c0_1 = arith.constant 0 : index
    %c0_2 = arith.constant 0 : index
    %1 = vector.load %arg2[%c0_1, %c0_2] : memref<32x64xbf16, #tpu.memory_space<vmem>>, vector<32x64xbf16>
    %cst = arith.constant dense<0.000000e+00> : vector<1000x64xf32>
    %2 = tpu.matmul %0, %1, %cst {dimension_numbers = #tpu.dot_dimension_numbers<[1], [0], [0], [1], [0, 0, 1, 1], [], []>} : vector<1000x32xbf16>, vector<32x64xbf16>, vector<1000x64xf32> -> vector<1000x64xf32>
    %c0_3 = arith.constant 0 : index
    %c0_4 = arith.constant 0 : index
    %3 = vector.load %arg3[%c0_3, %c0_4] : memref<1x64xf32, #tpu.memory_space<vmem>>, vector<1x64xf32>
    %4 = vector.broadcast %3 : vector<1x64xf32> to vector<1000x64xf32>
    %5 = arith.addf %2, %4 : vector<1000x64xf32>
    %c0_5 = arith.constant 0 : index
    %c0_6 = arith.constant 0 : index
    %6 = vector.load %arg4[%c0_5, %c0_6] : memref<1000x64xf32, #tpu.memory_space<vmem>>, vector<1000x64xf32>
    tpu.vector_store %arg4[%c0_5, %c0_6], %5 {strides = array<i32>} : memref<1000x64xf32, #tpu.memory_space<vmem>>, vector<1000x64xf32>,
    return
  }
  func.func @transform_0(%arg0: i32) -> (i32, i32) {
    %c0_i32 = arith.constant 0 : i32
    %c0_i32_0 = arith.constant 0 : i32
    return %arg0, %c0_i32 : i32, i32
  }
  func.func @transform_1(%arg0: i32) -> (i32, i32) {
    %c0_i32 = arith.constant 0 : i32
    %c0_i32_0 = arith.constant 0 : i32
    %c0_i32_1 = arith.constant 0 : i32
    return %c0_i32, %c0_i32_0 : i32, i32
  }
  func.func @transform_2(%arg0: i32) -> (i32, i32) {
    %c0_i32 = arith.constant 0 : i32
    %c0_i32_0 = arith.constant 0 : i32
    %c0_i32_1 = arith.constant 0 : i32
    return %c0_i32, %c0_i32_0 : i32, i32
  }
  func.func @transform_3(%arg0: i32) -> (i32, i32) {
    %c0_i32 = arith.constant 0 : i32
    %c0_i32_0 = arith.constant 0 : i32
    return %arg0, %c0_i32 : i32, i32
  }
}

</mosaic_0001>

<bundles_post_ra>
// kernel: _lambda_.1
= control target key start
LH: loop header
LB: loop body
LE: loop exit
PB: predicated region body
PF: predicated region fallthrough
CT: control target
= control target key end

     0   :  { %vm473_vm0 = vcmask 261120   ;;  %vm986_vm1 = vcmask 523264   ;;  %s2414_s1 = inlined_call_operand.vmem [shape: bf16[32,64], index: 1, kind: input, shape index: {}]   ;;  %s2415_s0 = inlined_call_operand.vmem [shape: bf16[1000,32], index: 0, kind: input, shape index: {}]   ;;  %s2416_s2 = inlined_call_operand.vmem [shape: f32[1,64], index: 2, kind: input, shape index: {}]   ;;  %s2417_s3 = inlined_call_operand.vmem [shape: f32[1000,64], index: 3, kind: output, shape index: {}]  }
   0x1   :  { %v1498_v0 = vld [vmem:[%s2414_s1 + $0x8] sm:$0xff]  ;;  %v1497_v1 = vld [vmem:[%s2414_s1] sm:$0xff]  ;;  %v1437_v10 = vld [vmem:[%s2415_s0 + $0x10] sm:$0xff] }
   0x2   :  { %669 = vmatpush.bf16.msra.mxu0 %v1498_v0  ;;  %1499 = vmatpush.bf16.msra.mxu1 %v1498_v0  ;;  %v1435_v2 = vld [vmem:[%s2415_s0] sm:$0xff]  ;;  %v1436_v6 = vld [vmem:[%s2415_s0 + $0x8] sm:$0xff]  ;;  %v1453_v11 = vld [vmem:[%s2415_s0 + $0x90] sm:$0xff] }
   0x3   :  { %1500 = vmatpush.bf16.msra.mxu2 %v1498_v0  ;;  %1501 = vmatpush.bf16.msra.mxu3 %v1498_v0  ;;  %v1451_v3 = vld [vmem:[%s2415_s0 + $0x80] sm:$0xff]  ;;  %v1452_v7 = vld [vmem:[%s2415_s0 + $0x88] sm:$0xff]  ;;  %v1469_v12 = vld [vmem:[%s2415_s0 + $0x110] sm:$0xff] }
   0x4   :  { %v1467_v4 = vld [vmem:[%s2415_s0 + $0x100] sm:$0xff]  ;;  %v1468_v8 = vld [vmem:[%s2415_s0 + $0x108] sm:$0xff]  ;;  %v1485_v13 = vld [vmem:[%s2415_s0 + $0x190] sm:$0xff] }
   0x5   :  { %v1483_v5 = vld [vmem:[%s2415_s0 + $0x180] sm:$0xff]  ;;  %v1484_v9 = vld [vmem:[%s2415_s0 + $0x188] sm:$0xff]  ;;  %v1438_v14 = vld [vmem:[%s2415_s0 + $0x18] sm:$0xff] }
   0x6   :  { %670 = vmatpush.bf16.msra.mxu0 %v1497_v1  ;;  %1502 = vmatpush.bf16.msra.mxu1 %v1497_v1  ;;  %v1454_v15 = vld [vmem:[%s2415_s0 + $0x98] sm:$0xff]  ;;  %v1439_v18 = vld [vmem:[%s2415_s0 + $0x20] sm:$0xff]  ;;  %v1440_v22 = vld [vmem:[%s2415_s0 + $0x28] sm:$0xff] }
   0x7   :  { %1503 = vmatpush.bf16.msra.mxu2 %v1497_v1  ;;  %1504 = vmatpush.bf16.msra.mxu3 %v1497_v1  ;;  %v1470_v16 = vld [vmem:[%s2415_s0 + $0x118] sm:$0xff]  ;;  %v1455_v19 = vld [vmem:[%s2415_s0 + $0xa0] sm:$0xff]  ;;  %v1456_v23 = vld [vmem:[%s2415_s0 + $0xa8] sm:$0xff] }
   0x8   :  { %v1486_v17 = vld [vmem:[%s2415_s0 + $0x198] sm:$0xff]  ;;  %v1471_v20 = vld [vmem:[%s2415_s0 + $0x120] sm:$0xff]  ;;  %v1472_v24 = vld [vmem:[%s2415_s0 + $0x128] sm:$0xff] }
   0x9   :  { %1372 = vmatmul.msk.bf16.vlgmr.msra.gmra.mxu0 %vm473_vm0, %v1435_v2  ;;  %1388 = vmatmul.msk.bf16.vlgmr.msra.gmra.mxu1 %vm473_vm0, %v1451_v3  ;;  %v1487_v21 = vld [vmem:[%s2415_s0 + $0x1a0] sm:$0xff]  ;;  %v1488_v25 = vld [vmem:[%s2415_s0 + $0x1a8] sm:$0xff]  ;;  %v1441_v26 = vld [vmem:[%s2415_s0 + $0x30] sm:$0xff] }
   0xa   :  { %1404 = vmatmul.msk.bf16.vlgmr.msra.gmra.mxu2 %vm473_vm0, %v1467_v4  ;;  %1420 = vmatmul.msk.bf16.vlgmr.msra.gmra.mxu3 %vm473_vm0, %v1483_v5  ;;  %v1457_v27 = vld [vmem:[%s2415_s0 + $0xb0] sm:$0xff]  ;;  %v1442_v30 = vld [vmem:[%s2415_s0 + $0x38] sm:$0xff]  ;;  %v1663_v34 = vld [vmem:[%s2416_s2] ss:$0 sm:$0xff] }
   0xb   :  { %v1473_v28 = vld [vmem:[%s2415_s0 + $0x130] sm:$0xff]  ;;  %v1458_v31 = vld [vmem:[%s2415_s0 + $0xb8] sm:$0xff]  ;;  %v1443_v35 = vld [vmem:[%s2415_s0 + $0x40] sm:$0xff] }
   0xc   :  { %v1489_v29 = vld [vmem:[%s2415_s0 + $0x1b0] sm:$0xff]  ;;  %v1474_v32 = vld [vmem:[%s2415_s0 + $0x138] sm:$0xff]  ;;  %v1459_v36 = vld [vmem:[%s2415_s0 + $0xc0] sm:$0xff] }
   0xd   :  { %v1490_v33 = vld [vmem:[%s2415_s0 + $0x1b8] sm:$0xff]  ;;  %v1475_v39 = vld [vmem:[%s2415_s0 + $0x140] sm:$0xff]  ;;  %v1444_v52 = vld [vmem:[%s2415_s0 + $0x48] sm:$0xff] }
   0xe   :  { %v1491_v40 = vld [vmem:[%s2415_s0 + $0x1c0] sm:$0xff]  ;;  %v1460_v53 = vld [vmem:[%s2415_s0 + $0xc8] sm:$0xff] }
   0xf   :  { %v1476_v58 = vld [vmem:[%s2415_s0 + $0x148] sm:$0xff] }
  0x10   :  { %v1492_v59 = vld [vmem:[%s2415_s0 + $0x1c8] sm:$0xff] }
  0x19   :  { %1373 = vmatmul.msk.bf16.gmra.mxu0 %vm473_vm0, %v1436_v6  ;;  %1389 = vmatmul.msk.bf16.gmra.mxu1 %vm473_vm0, %v1452_v7 }
  0x1a   :  { %1405 = vmatmul.msk.bf16.gmra.mxu2 %vm473_vm0, %v1468_v8  ;;  %1421 = vmatmul.msk.bf16.gmra.mxu3 %vm473_vm0, %v1484_v9  ;;  %v1445_v8 = vld [vmem:[%s2415_s0 + $0x50] sm:$0xff] }
  0x1b   :  { %v1461_v9 = vld [vmem:[%s2415_s0 + $0xd0] sm:$0xff] }
  0x29   :  { %1374 = vmatmul.msk.bf16.gmra.mxu0 %vm473_vm0, %v1437_v10  ;;  %1390 = vmatmul.msk.bf16.gmra.mxu1 %vm473_vm0, %v1453_v11 }
  0x2a   :  { %1406 = vmatmul.msk.bf16.gmra.mxu2 %vm473_vm0, %v1469_v12  ;;  %1422 = vmatmul.msk.bf16.gmra.mxu3 %vm473_vm0, %v1485_v13 }
  0x39   :  { %1375 = vmatmul.msk.bf16.gmra.mxu0 %vm473_vm0, %v1438_v14  ;;  %1391 = vmatmul.msk.bf16.gmra.mxu1 %vm473_vm0, %v1454_v15  ;;  %v1477_v14 = vld [vmem:[%s2415_s0 + $0x150] sm:$0xff] }
  0x3a   :  { %1407 = vmatmul.msk.bf16.gmra.mxu2 %vm473_vm0, %v1470_v16  ;;  %1423 = vmatmul.msk.bf16.gmra.mxu3 %vm473_vm0, %v1486_v17  ;;  %v1493_v15 = vld [vmem:[%s2415_s0 + $0x1d0] sm:$0xff] }
  0x49   :  { %1376 = vmatmul.msk.bf16.gmra.mxu0 %vm473_vm0, %v1439_v18  ;;  %1392 = vmatmul.msk.bf16.gmra.mxu1 %vm473_vm0, %v1455_v19 }
  0x4a   :  { %1408 = vmatmul.msk.bf16.gmra.mxu2 %vm473_vm0, %v1471_v20  ;;  %1424 = vmatmul.msk.bf16.gmra.mxu3 %vm473_vm0, %v1487_v21 }
  0x59   :  { %1377 = vmatmul.msk.bf16.gmra.mxu0 %vm473_vm0, %v1440_v22  ;;  %1393 = vmatmul.msk.bf16.gmra.mxu1 %vm473_vm0, %v1456_v23 }
  0x5a   :  { %1409 = vmatmul.msk.bf16.gmra.mxu2 %vm473_vm0, %v1472_v24  ;;  %1425 = vmatmul.msk.bf16.gmra.mxu3 %vm473_vm0, %v1488_v25 }
  0x69   :  { %1378 = vmatmul.msk.bf16.gmra.mxu0 %vm473_vm0, %v1441_v26  ;;  %1394 = vmatmul.msk.bf16.gmra.mxu1 %vm473_vm0, %v1457_v27 }
  0x6a   :  { %1410 = vmatmul.msk.bf16.gmra.mxu2 %vm473_vm0, %v1473_v28  ;;  %1426 = vmatmul.msk.bf16.gmra.mxu3 %vm473_vm0, %v1489_v29  ;;  %v1446_v28 = vld [vmem:[%s2415_s0 + $0x58] sm:$0xff] }
  0x6b   :  { %v1462_v29 = vld [vmem:[%s2415_s0 + $0xd8] sm:$0xff] }
  0x79   :  { %1379 = vmatmul.msk.bf16.gmra.mxu0 %vm473_vm0, %v1442_v30  ;;  %1395 = vmatmul.msk.bf16.gmra.mxu1 %vm473_vm0, %v1458_v31 }
  0x7a   :  { %1411 = vmatmul.msk.bf16.gmra.mxu2 %vm473_vm0, %v1474_v32  ;;  %1427 = vmatmul.msk.bf16.gmra.mxu3 %vm473_vm0, %v1490_v33 }
  0x86   :  { %v672_v37 = vpop.f32.mrf.mxu0  ;;  %v752_v38 = vpop.f32.mrf.mxu1 }
  0x87   :  { %v673_v41 = vadd.f32 %v1663_v34, %v672_v37  ;;  %v753_v42 = vadd.f32 %v1663_v34, %v752_v38 }
  0x89   :  { %987 = vst.msk [vmem:[%s2417_s3] sm:$0xff] %vm986_vm1, %v673_v41  ;;  %1380 = vmatmul.msk.bf16.gmra.mxu0 %vm473_vm0, %v1443_v35  ;;  %1396 = vmatmul.msk.bf16.gmra.mxu1 %vm473_vm0, %v1459_v36  ;;  %v1478_v35 = vld [vmem:[%s2415_s0 + $0x158] sm:$0xff] }
  0x8a   :  { %1019 = vst.msk [vmem:[%s2417_s3 + $0x100] sm:$0xff] %vm986_vm1, %v753_v42  ;;  %1412 = vmatmul.msk.bf16.gmra.mxu2 %vm473_vm0, %v1475_v39  ;;  %1428 = vmatmul.msk.bf16.gmra.mxu3 %vm473_vm0, %v1491_v40  ;;  %v1494_v36 = vld [vmem:[%s2415_s0 + $0x1d8] sm:$0xff] }
  0x8d   :  { %v832_v43 = vpop.f32.mrf.mxu2  ;;  %v912_v44 = vpop.f32.mrf.mxu3 }
  0x8e   :  { %v833_v45 = vadd.f32 %v1663_v34, %v832_v43  ;;  %v674_v46 = vpop.f32.mrf.mxu0  ;;  %v754_v47 = vpop.f32.mrf.mxu1  ;;  %v913_v50 = vadd.f32 %v1663_v34, %v912_v44 }
  0x8f   :  { %v675_v48 = vadd.f32 %v1663_v34, %v674_v46  ;;  %v755_v49 = vadd.f32 %v1663_v34, %v754_v47 }
  0x90   :  { %1051 = vst.msk [vmem:[%s2417_s3 + $0x200] sm:$0xff] %vm986_vm1, %v833_v45 }
  0x91   :  { %988 = vst.msk [vmem:[%s2417_s3 + $0x8] sm:$0xff] %vm986_vm1, %v675_v48 }
  0x92   :  { %1020 = vst.msk [vmem:[%s2417_s3 + $0x108] sm:$0xff] %vm986_vm1, %v755_v49  ;;  %v1447_v49 = vld [vmem:[%s2415_s0 + $0x60] sm:$0xff] }
  0x93   :  { %1083 = vst.msk [vmem:[%s2417_s3 + $0x300] sm:$0xff] %vm986_vm1, %v913_v50  ;;  %v1463_v50 = vld [vmem:[%s2415_s0 + $0xe0] sm:$0xff] }
  0x95   :  { %v834_v51 = vpop.f32.mrf.mxu2  ;;  %v914_v54 = vpop.f32.mrf.mxu3 }
  0x96   :  { %v835_v55 = vadd.f32 %v1663_v34, %v834_v51  ;;  %v677_v56 = vpop.f32.mrf.mxu0  ;;  %v757_v57 = vpop.f32.mrf.mxu1  ;;  %v915_v62 = vadd.f32 %v1663_v34, %v914_v54 }
  0x97   :  { %v678_v60 = vadd.f32 %v1663_v34, %v677_v56  ;;  %v758_v61 = vadd.f32 %v1663_v34, %v757_v57  ;;  %v1495_v56 = vld [vmem:[%s2415_s0 + $0x1e0] sm:$0xff] }
  0x98   :  { %1052 = vst.msk [vmem:[%s2417_s3 + $0x208] sm:$0xff] %vm986_vm1, %v835_v55  ;;  %v1479_v55 = vld [vmem:[%s2415_s0 + $0x160] sm:$0xff] }
  0x99   :  { %989 = vst.msk [vmem:[%s2417_s3 + $0x10] sm:$0xff] %vm986_vm1, %v678_v60  ;;  %1381 = vmatmul.msk.bf16.gmra.mxu0 %vm473_vm0, %v1444_v52  ;;  %1397 = vmatmul.msk.bf16.gmra.mxu1 %vm473_vm0, %v1460_v53 }
  0x9a   :  { %1021 = vst.msk [vmem:[%s2417_s3 + $0x110] sm:$0xff] %vm986_vm1, %v758_v61  ;;  %1413 = vmatmul.msk.bf16.gmra.mxu2 %vm473_vm0, %v1476_v58  ;;  %1429 = vmatmul.msk.bf16.gmra.mxu3 %vm473_vm0, %v1492_v59 }
  0x9b   :  { %1084 = vst.msk [vmem:[%s2417_s3 + $0x308] sm:$0xff] %vm986_vm1, %v915_v62 }
  0x9d   :  { %v837_v63 = vpop.f32.mrf.mxu2  ;;  %v917_v0 = vpop.f32.mrf.mxu3 }
  0x9e   :  { %v838_v1 = vadd.f32 %v1663_v34, %v837_v63  ;;  %v679_v2 = vpop.f32.mrf.mxu0  ;;  %v759_v3 = vpop.f32.mrf.mxu1  ;;  %v918_v6 = vadd.f32 %v1663_v34, %v917_v0 }
  0x9f   :  { %v680_v4 = vadd.f32 %v1663_v34, %v679_v2  ;;  %v760_v5 = vadd.f32 %v1663_v34, %v759_v3 }
  0xa0   :  { %1053 = vst.msk [vmem:[%s2417_s3 + $0x210] sm:$0xff] %vm986_vm1, %v838_v1 }
  0xa1   :  { %990 = vst.msk [vmem:[%s2417_s3 + $0x18] sm:$0xff] %vm986_vm1, %v680_v4 }
  0xa2   :  { %1022 = vst.msk [vmem:[%s2417_s3 + $0x118] sm:$0xff] %vm986_vm1, %v760_v5  ;;  %v1448_v5 = vld [vmem:[%s2415_s0 + $0x68] sm:$0xff] }
  0xa3   :  { %1085 = vst.msk [vmem:[%s2417_s3 + $0x310] sm:$0xff] %vm986_vm1, %v918_v6  ;;  %v1464_v6 = vld [vmem:[%s2415_s0 + $0xe8] sm:$0xff] }
  0xa5   :  { %v839_v7 = vpop.f32.mrf.mxu2  ;;  %v919_v10 = vpop.f32.mrf.mxu3 }
  0xa6   :  { %v840_v11 = vadd.f32 %v1663_v34, %v839_v7  ;;  %v682_v12 = vpop.f32.mrf.mxu0  ;;  %v762_v13 = vpop.f32.mrf.mxu1  ;;  %v920_v18 = vadd.f32 %v1663_v34, %v919_v10 }
  0xa7   :  { %v683_v16 = vadd.f32 %v1663_v34, %v682_v12  ;;  %v763_v17 = vadd.f32 %v1663_v34, %v762_v13  ;;  %v1496_v12 = vld [vmem:[%s2415_s0 + $0x1e8] sm:$0xff] }
  0xa8   :  { %1054 = vst.msk [vmem:[%s2417_s3 + $0x218] sm:$0xff] %vm986_vm1, %v840_v11  ;;  %v1480_v11 = vld [vmem:[%s2415_s0 + $0x168] sm:$0xff] }
  0xa9   :  { %991 = vst.msk [vmem:[%s2417_s3 + $0x20] sm:$0xff] %vm986_vm1, %v683_v16  ;;  %1382 = vmatmul.msk.bf16.gmra.mxu0 %vm473_vm0, %v1445_v8  ;;  %1398 = vmatmul.msk.bf16.gmra.mxu1 %vm473_vm0, %v1461_v9 }
  0xaa   :  { %1023 = vst.msk [vmem:[%s2417_s3 + $0x120] sm:$0xff] %vm986_vm1, %v763_v17  ;;  %1414 = vmatmul.msk.bf16.gmra.mxu2 %vm473_vm0, %v1477_v14  ;;  %1430 = vmatmul.msk.bf16.gmra.mxu3 %vm473_vm0, %v1493_v15 }
  0xab   :  { %1086 = vst.msk [vmem:[%s2417_s3 + $0x318] sm:$0xff] %vm986_vm1, %v920_v18 }
  0xad   :  { %v842_v19 = vpop.f32.mrf.mxu2  ;;  %v922_v20 = vpop.f32.mrf.mxu3 }
  0xae   :  { %v843_v21 = vadd.f32 %v1663_v34, %v842_v19  ;;  %v684_v22 = vpop.f32.mrf.mxu0  ;;  %v764_v23 = vpop.f32.mrf.mxu1  ;;  %v923_v26 = vadd.f32 %v1663_v34, %v922_v20 }
  0xaf   :  { %v685_v24 = vadd.f32 %v1663_v34, %v684_v22  ;;  %v765_v25 = vadd.f32 %v1663_v34, %v764_v23 }
  0xb0   :  { %1055 = vst.msk [vmem:[%s2417_s3 + $0x220] sm:$0xff] %vm986_vm1, %v843_v21 }
  0xb1   :  { %992 = vst.msk [vmem:[%s2417_s3 + $0x28] sm:$0xff] %vm986_vm1, %v685_v24  ;;  %v139_v24 = vld [vmem:[%s2415_s0 + $0x1f0] sm:$0xf] }
  0xb2   :  { %1024 = vst.msk [vmem:[%s2417_s3 + $0x128] sm:$0xff] %vm986_vm1, %v765_v25  ;;  %v397_v25 = vunpack.c.l.b16 %v139_v24 }
  0xb3   :  { %1087 = vst.msk [vmem:[%s2417_s3 + $0x320] sm:$0xff] %vm986_vm1, %v923_v26 }
  0xb5   :  { %v844_v27 = vpop.f32.mrf.mxu2  ;;  %v924_v30 = vpop.f32.mrf.mxu3 }
  0xb6   :  { %v845_v31 = vadd.f32 %v1663_v34, %v844_v27  ;;  %v687_v32 = vpop.f32.mrf.mxu0  ;;  %v767_v33 = vpop.f32.mrf.mxu1  ;;  %v925_v39 = vadd.f32 %v1663_v34, %v924_v30  ;;  %v1449_v27 = vld [vmem:[%s2415_s0 + $0x70] sm:$0xff] }
  0xb7   :  { %v688_v37 = vadd.f32 %v1663_v34, %v687_v32  ;;  %v768_v38 = vadd.f32 %v1663_v34, %v767_v33  ;;  %v1481_v33 = vld [vmem:[%s2415_s0 + $0x170] sm:$0xff] }
  0xb8   :  { %1056 = vst.msk [vmem:[%s2417_s3 + $0x228] sm:$0xff] %vm986_vm1, %v845_v31 }
  0xb9   :  { %993 = vst.msk [vmem:[%s2417_s3 + $0x30] sm:$0xff] %vm986_vm1, %v688_v37  ;;  %1383 = vmatmul.msk.bf16.gmra.mxu0 %vm473_vm0, %v1446_v28  ;;  %1399 = vmatmul.msk.bf16.gmra.mxu1 %vm473_vm0, %v1462_v29  ;;  %v1465_v28 = vld [vmem:[%s2415_s0 + $0xf0] sm:$0xff] }
  0xba   :  { %1025 = vst.msk [vmem:[%s2417_s3 + $0x130] sm:$0xff] %vm986_vm1, %v768_v38  ;;  %1415 = vmatmul.msk.bf16.gmra.mxu2 %vm473_vm0, %v1478_v35  ;;  %1431 = vmatmul.msk.bf16.gmra.mxu3 %vm473_vm0, %v1494_v36  ;;  %v460_v35 = vpack.c.b16 %v397_v25, %v397_v25 }
  0xbb   :  { %1088 = vst.msk [vmem:[%s2417_s3 + $0x328] sm:$0xff] %vm986_vm1, %v925_v39 }
  0xbd   :  { %v847_v40 = vpop.f32.mrf.mxu2  ;;  %v927_v41 = vpop.f32.mrf.mxu3 }
  0xbe   :  { %v848_v42 = vadd.f32 %v1663_v34, %v847_v40  ;;  %v689_v43 = vpop.f32.mrf.mxu0  ;;  %v769_v44 = vpop.f32.mrf.mxu1  ;;  %v928_v47 = vadd.f32 %v1663_v34, %v927_v41 }
  0xbf   :  { %v690_v45 = vadd.f32 %v1663_v34, %v689_v43  ;;  %v770_v46 = vadd.f32 %v1663_v34, %v769_v44 }
  0xc0   :  { %1057 = vst.msk [vmem:[%s2417_s3 + $0x230] sm:$0xff] %vm986_vm1, %v848_v42 }
  0xc1   :  { %994 = vst.msk [vmem:[%s2417_s3 + $0x38] sm:$0xff] %vm986_vm1, %v690_v45 }
  0xc2   :  { %1026 = vst.msk [vmem:[%s2417_s3 + $0x138] sm:$0xff] %vm986_vm1, %v770_v46 }
  0xc3   :  { %1089 = vst.msk [vmem:[%s2417_s3 + $0x330] sm:$0xff] %vm986_vm1, %v928_v47 }
  0xc5   :  { %v849_v48 = vpop.f32.mrf.mxu2  ;;  %v929_v51 = vpop.f32.mrf.mxu3 }
  0xc6   :  { %v850_v52 = vadd.f32 %v1663_v34, %v849_v48  ;;  %v692_v53 = vpop.f32.mrf.mxu0  ;;  %v772_v54 = vpop.f32.mrf.mxu1  ;;  %v930_v59 = vadd.f32 %v1663_v34, %v929_v51  ;;  %v1450_v48 = vld [vmem:[%s2415_s0 + $0x78] sm:$0xff] }
  0xc7   :  { %v693_v57 = vadd.f32 %v1663_v34, %v692_v53  ;;  %v773_v58 = vadd.f32 %v1663_v34, %v772_v54  ;;  %v1482_v54 = vld [vmem:[%s2415_s0 + $0x178] sm:$0xff] }
  0xc8   :  { %1058 = vst.msk [vmem:[%s2417_s3 + $0x238] sm:$0xff] %vm986_vm1, %v850_v52 }
  0xc9   :  { %995 = vst.msk [vmem:[%s2417_s3 + $0x40] sm:$0xff] %vm986_vm1, %v693_v57  ;;  %1384 = vmatmul.msk.bf16.gmra.mxu0 %vm473_vm0, %v1447_v49  ;;  %1400 = vmatmul.msk.bf16.gmra.mxu1 %vm473_vm0, %v1463_v50  ;;  %v1466_v49 = vld [vmem:[%s2415_s0 + $0xf8] sm:$0xff] }
  0xca   :  { %1027 = vst.msk [vmem:[%s2417_s3 + $0x140] sm:$0xff] %vm986_vm1, %v773_v58  ;;  %1416 = vmatmul.msk.bf16.gmra.mxu2 %vm473_vm0, %v1479_v55  ;;  %1432 = vmatmul.msk.bf16.gmra.mxu3 %vm473_vm0, %v1495_v56 }
  0xcb   :  { %1090 = vst.msk [vmem:[%s2417_s3 + $0x338] sm:$0xff] %vm986_vm1, %v930_v59 }
  0xcd   :  { %v852_v60 = vpop.f32.mrf.mxu2  ;;  %v932_v61 = vpop.f32.mrf.mxu3 }
  0xce   :  { %v853_v62 = vadd.f32 %v1663_v34, %v852_v60  ;;  %v694_v63 = vpop.f32.mrf.mxu0  ;;  %v774_v0 = vpop.f32.mrf.mxu1  ;;  %v933_v3 = vadd.f32 %v1663_v34, %v932_v61 }
  0xcf   :  { %v695_v1 = vadd.f32 %v1663_v34, %v694_v63  ;;  %v775_v2 = vadd.f32 %v1663_v34, %v774_v0 }
  0xd0   :  { %1059 = vst.msk [vmem:[%s2417_s3 + $0x240] sm:$0xff] %vm986_vm1, %v853_v62 }
  0xd1   :  { %996 = vst.msk [vmem:[%s2417_s3 + $0x48] sm:$0xff] %vm986_vm1, %v695_v1 }
  0xd2   :  { %1028 = vst.msk [vmem:[%s2417_s3 + $0x148] sm:$0xff] %vm986_vm1, %v775_v2 }
  0xd3   :  { %1091 = vst.msk [vmem:[%s2417_s3 + $0x340] sm:$0xff] %vm986_vm1, %v933_v3 }
  0xd5   :  { %v854_v4 = vpop.f32.mrf.mxu2  ;;  %v934_v7 = vpop.f32.mrf.mxu3 }
  0xd6   :  { %v855_v8 = vadd.f32 %v1663_v34, %v854_v4  ;;  %v697_v9 = vpop.f32.mrf.mxu0  ;;  %v777_v10 = vpop.f32.mrf.mxu1  ;;  %v935_v15 = vadd.f32 %v1663_v34, %v934_v7 }
  0xd7   :  { %v698_v13 = vadd.f32 %v1663_v34, %v697_v9  ;;  %v778_v14 = vadd.f32 %v1663_v34, %v777_v10 }
  0xd8   :  { %1060 = vst.msk [vmem:[%s2417_s3 + $0x248] sm:$0xff] %vm986_vm1, %v855_v8 }
  0xd9   :  { %997 = vst.msk [vmem:[%s2417_s3 + $0x50] sm:$0xff] %vm986_vm1, %v698_v13  ;;  %1385 = vmatmul.msk.bf16.gmra.mxu0 %vm473_vm0, %v1448_v5  ;;  %1401 = vmatmul.msk.bf16.gmra.mxu1 %vm473_vm0, %v1464_v6 }
  0xda   :  { %1029 = vst.msk [vmem:[%s2417_s3 + $0x150] sm:$0xff] %vm986_vm1, %v778_v14  ;;  %1417 = vmatmul.msk.bf16.gmra.mxu2 %vm473_vm0, %v1480_v11  ;;  %1433 = vmatmul.msk.bf16.gmra.mxu3 %vm473_vm0, %v1496_v12 }
  0xdb   :  { %1092 = vst.msk [vmem:[%s2417_s3 + $0x348] sm:$0xff] %vm986_vm1, %v935_v15 }
  0xdd   :  { %v857_v16 = vpop.f32.mrf.mxu2  ;;  %v937_v17 = vpop.f32.mrf.mxu3 }
  0xde   :  { %v858_v18 = vadd.f32 %v1663_v34, %v857_v16  ;;  %v699_v19 = vpop.f32.mrf.mxu0  ;;  %v779_v20 = vpop.f32.mrf.mxu1  ;;  %v938_v23 = vadd.f32 %v1663_v34, %v937_v17 }
  0xdf   :  { %v700_v21 = vadd.f32 %v1663_v34, %v699_v19  ;;  %v780_v22 = vadd.f32 %v1663_v34, %v779_v20 }
  0xe0   :  { %1061 = vst.msk [vmem:[%s2417_s3 + $0x250] sm:$0xff] %vm986_vm1, %v858_v18 }
  0xe1   :  { %998 = vst.msk [vmem:[%s2417_s3 + $0x58] sm:$0xff] %vm986_vm1, %v700_v21 }
  0xe2   :  { %1030 = vst.msk [vmem:[%s2417_s3 + $0x158] sm:$0xff] %vm986_vm1, %v780_v22 }
  0xe3   :  { %1093 = vst.msk [vmem:[%s2417_s3 + $0x350] sm:$0xff] %vm986_vm1, %v938_v23 }
  0xe5   :  { %v859_v26 = vpop.f32.mrf.mxu2  ;;  %v939_v29 = vpop.f32.mrf.mxu3 }
  0xe6   :  { %v860_v30 = vadd.f32 %v1663_v34, %v859_v26  ;;  %v702_v31 = vpop.f32.mrf.mxu0  ;;  %v782_v32 = vpop.f32.mrf.mxu1  ;;  %v940_v38 = vadd.f32 %v1663_v34, %v939_v29 }
  0xe7   :  { %v703_v36 = vadd.f32 %v1663_v34, %v702_v31  ;;  %v783_v37 = vadd.f32 %v1663_v34, %v782_v32 }
  0xe8   :  { %1062 = vst.msk [vmem:[%s2417_s3 + $0x258] sm:$0xff] %vm986_vm1, %v860_v30 }
  0xe9   :  { %999 = vst.msk [vmem:[%s2417_s3 + $0x60] sm:$0xff] %vm986_vm1, %v703_v36  ;;  %1386 = vmatmul.msk.bf16.gmra.mxu0 %vm473_vm0, %v1449_v27  ;;  %1402 = vmatmul.msk.bf16.gmra.mxu1 %vm473_vm0, %v1465_v28 }
  0xea   :  { %1031 = vst.msk [vmem:[%s2417_s3 + $0x160] sm:$0xff] %vm986_vm1, %v783_v37  ;;  %1418 = vmatmul.msk.bf16.gmra.mxu2 %vm473_vm0, %v1481_v33  ;;  %1434 = vmatmul.msk.bf16.gmra.mxu3 %vm473_vm0, %v460_v35 }
  0xeb   :  { %1094 = vst.msk [vmem:[%s2417_s3 + $0x358] sm:$0xff] %vm986_vm1, %v940_v38 }
  0xed   :  { %v862_v39 = vpop.f32.mrf.mxu2  ;;  %v942_v40 = vpop.f32.mrf.mxu3 }
  0xee   :  { %v863_v41 = vadd.f32 %v1663_v34, %v862_v39  ;;  %v704_v42 = vpop.f32.mrf.mxu0  ;;  %v784_v43 = vpop.f32.mrf.mxu1  ;;  %v943_v46 = vadd.f32 %v1663_v34, %v942_v40 }
  0xef   :  { %v705_v44 = vadd.f32 %v1663_v34, %v704_v42  ;;  %v785_v45 = vadd.f32 %v1663_v34, %v784_v43 }
  0xf0   :  { %1063 = vst.msk [vmem:[%s2417_s3 + $0x260] sm:$0xff] %vm986_vm1, %v863_v41 }
  0xf1   :  { %1000 = vst.msk [vmem:[%s2417_s3 + $0x68] sm:$0xff] %vm986_vm1, %v705_v44 }
  0xf2   :  { %1032 = vst.msk [vmem:[%s2417_s3 + $0x168] sm:$0xff] %vm986_vm1, %v785_v45 }
  0xf3   :  { %1095 = vst.msk [vmem:[%s2417_s3 + $0x360] sm:$0xff] %vm986_vm1, %v943_v46 }
  0xf5   :  { %v864_v47 = vpop.f32.mrf.mxu2  ;;  %v944_v50 = vpop.f32.mrf.mxu3 }
  0xf6   :  { %v865_v51 = vadd.f32 %v1663_v34, %v864_v47  ;;  %v707_v52 = vpop.f32.mrf.mxu0  ;;  %v787_v53 = vpop.f32.mrf.mxu1  ;;  %v945_v57 = vadd.f32 %v1663_v34, %v944_v50 }
  0xf7   :  { %v708_v55 = vadd.f32 %v1663_v34, %v707_v52  ;;  %v788_v56 = vadd.f32 %v1663_v34, %v787_v53 }
  0xf8   :  { %1064 = vst.msk [vmem:[%s2417_s3 + $0x268] sm:$0xff] %vm986_vm1, %v865_v51 }
  0xf9   :  { %1001 = vst.msk [vmem:[%s2417_s3 + $0x70] sm:$0xff] %vm986_vm1, %v708_v55  ;;  %1387 = vmatmul.msk.bf16.gmra.mxu0 %vm473_vm0, %v1450_v48  ;;  %1403 = vmatmul.msk.bf16.gmra.mxu1 %vm473_vm0, %v1466_v49 }
  0xfa   :  { %1033 = vst.msk [vmem:[%s2417_s3 + $0x170] sm:$0xff] %vm986_vm1, %v788_v56  ;;  %1419 = vmatmul.msk.bf16.gmra.mxu2 %vm473_vm0, %v1482_v54 }
  0xfb   :  { %1096 = vst.msk [vmem:[%s2417_s3 + $0x368] sm:$0xff] %vm986_vm1, %v945_v57 }
  0xfd   :  { %v867_v58 = vpop.f32.mrf.mxu2  ;;  %v947_v59 = vpop.f32.mrf.mxu3 }
  0xfe   :  { %v868_v60 = vadd.f32 %v1663_v34, %v867_v58  ;;  %v709_v61 = vpop.f32.mrf.mxu0  ;;  %v789_v62 = vpop.f32.mrf.mxu1  ;;  %v948_v1 = vadd.f32 %v1663_v34, %v947_v59 }
  0xff   :  { %v710_v63 = vadd.f32 %v1663_v34, %v709_v61  ;;  %v790_v0 = vadd.f32 %v1663_v34, %v789_v62 }
 0x100   :  { %1065 = vst.msk [vmem:[%s2417_s3 + $0x270] sm:$0xff] %vm986_vm1, %v868_v60 }
 0x101   :  { %1002 = vst.msk [vmem:[%s2417_s3 + $0x78] sm:$0xff] %vm986_vm1, %v710_v63 }
 0x102   :  { %1034 = vst.msk [vmem:[%s2417_s3 + $0x178] sm:$0xff] %vm986_vm1, %v790_v0 }
 0x103   :  { %1097 = vst.msk [vmem:[%s2417_s3 + $0x370] sm:$0xff] %vm986_vm1, %v948_v1 }
 0x105   :  { %v869_v2 = vpop.f32.mrf.mxu2  ;;  %v949_v3 = vpop.f32.mrf.mxu3 }
 0x106   :  { %v870_v4 = vadd.f32 %v1663_v34, %v869_v2  ;;  %v712_v5 = vpop.f32.mrf.mxu0  ;;  %v792_v6 = vpop.f32.mrf.mxu1  ;;  %v950_v9 = vadd.f32 %v1663_v34, %v949_v3 }
 0x107   :  { %v713_v7 = vadd.f32 %v1663_v34, %v712_v5  ;;  %v793_v8 = vadd.f32 %v1663_v34, %v792_v6 }
 0x108   :  { %1066 = vst.msk [vmem:[%s2417_s3 + $0x278] sm:$0xff] %vm986_vm1, %v870_v4 }
 0x109   :  { %1003 = vst.msk [vmem:[%s2417_s3 + $0x80] sm:$0xff] %vm986_vm1, %v713_v7 }
 0x10a   :  { %1035 = vst.msk [vmem:[%s2417_s3 + $0x180] sm:$0xff] %vm986_vm1, %v793_v8 }
 0x10b   :  { %1098 = vst.msk [vmem:[%s2417_s3 + $0x378] sm:$0xff] %vm986_vm1, %v950_v9 }
 0x10d   :  { %v872_v10 = vpop.f32.mrf.mxu2  ;;  %v952_v11 = vpop.f32.mrf.mxu3 }
 0x10e   :  { %v873_v12 = vadd.f32 %v1663_v34, %v872_v10  ;;  %v714_v13 = vpop.f32.mrf.mxu0  ;;  %v794_v14 = vpop.f32.mrf.mxu1  ;;  %v953_v17 = vadd.f32 %v1663_v34, %v952_v11 }
 0x10f   :  { %v715_v15 = vadd.f32 %v1663_v34, %v714_v13  ;;  %v795_v16 = vadd.f32 %v1663_v34, %v794_v14 }
 0x110   :  { %1067 = vst.msk [vmem:[%s2417_s3 + $0x280] sm:$0xff] %vm986_vm1, %v873_v12 }
 0x111   :  { %1004 = vst.msk [vmem:[%s2417_s3 + $0x88] sm:$0xff] %vm986_vm1, %v715_v15 }
 0x112   :  { %1036 = vst.msk [vmem:[%s2417_s3 + $0x188] sm:$0xff] %vm986_vm1, %v795_v16 }
 0x113   :  { %1099 = vst.msk [vmem:[%s2417_s3 + $0x380] sm:$0xff] %vm986_vm1, %v953_v17 }
 0x115   :  { %v874_v18 = vpop.f32.mrf.mxu2  ;;  %v954_v19 = vpop.f32.mrf.mxu3 }
 0x116   :  { %v875_v20 = vadd.f32 %v1663_v34, %v874_v18  ;;  %v717_v21 = vpop.f32.mrf.mxu0  ;;  %v797_v22 = vpop.f32.mrf.mxu1  ;;  %v955_v25 = vadd.f32 %v1663_v34, %v954_v19 }
 0x117   :  { %v718_v23 = vadd.f32 %v1663_v34, %v717_v21  ;;  %v798_v24 = vadd.f32 %v1663_v34, %v797_v22 }
 0x118   :  { %1068 = vst.msk [vmem:[%s2417_s3 + $0x288] sm:$0xff] %vm986_vm1, %v875_v20 }
 0x119   :  { %1005 = vst.msk [vmem:[%s2417_s3 + $0x90] sm:$0xff] %vm986_vm1, %v718_v23 }
 0x11a   :  { %1037 = vst.msk [vmem:[%s2417_s3 + $0x190] sm:$0xff] %vm986_vm1, %v798_v24 }
 0x11b   :  { %1100 = vst.msk [vmem:[%s2417_s3 + $0x388] sm:$0xff] %vm986_vm1, %v955_v25 }
 0x11d   :  { %v877_v26 = vpop.f32.mrf.mxu2  ;;  %v957_v27 = vpop.f32.mrf.mxu3 }
 0x11e   :  { %v878_v28 = vadd.f32 %v1663_v34, %v877_v26  ;;  %v719_v29 = vpop.f32.mrf.mxu0  ;;  %v799_v30 = vpop.f32.mrf.mxu1  ;;  %v958_v33 = vadd.f32 %v1663_v34, %v957_v27 }
 0x11f   :  { %v720_v31 = vadd.f32 %v1663_v34, %v719_v29  ;;  %v800_v32 = vadd.f32 %v1663_v34, %v799_v30 }
 0x120   :  { %1069 = vst.msk [vmem:[%s2417_s3 + $0x290] sm:$0xff] %vm986_vm1, %v878_v28 }
 0x121   :  { %1006 = vst.msk [vmem:[%s2417_s3 + $0x98] sm:$0xff] %vm986_vm1, %v720_v31 }
 0x122   :  { %1038 = vst.msk [vmem:[%s2417_s3 + $0x198] sm:$0xff] %vm986_vm1, %v800_v32 }
 0x123   :  { %1101 = vst.msk [vmem:[%s2417_s3 + $0x390] sm:$0xff] %vm986_vm1, %v958_v33 }
 0x125   :  { %v879_v35 = vpop.f32.mrf.mxu2  ;;  %v959_v36 = vpop.f32.mrf.mxu3 }
 0x126   :  { %v880_v37 = vadd.f32 %v1663_v34, %v879_v35  ;;  %v722_v38 = vpop.f32.mrf.mxu0  ;;  %v802_v39 = vpop.f32.mrf.mxu1  ;;  %v960_v42 = vadd.f32 %v1663_v34, %v959_v36 }
 0x127   :  { %v723_v40 = vadd.f32 %v1663_v34, %v722_v38  ;;  %v803_v41 = vadd.f32 %v1663_v34, %v802_v39 }
 0x128   :  { %1070 = vst.msk [vmem:[%s2417_s3 + $0x298] sm:$0xff] %vm986_vm1, %v880_v37 }
 0x129   :  { %1007 = vst.msk [vmem:[%s2417_s3 + $0xa0] sm:$0xff] %vm986_vm1, %v723_v40 }
 0x12a   :  { %1039 = vst.msk [vmem:[%s2417_s3 + $0x1a0] sm:$0xff] %vm986_vm1, %v803_v41 }
 0x12b   :  { %1102 = vst.msk [vmem:[%s2417_s3 + $0x398] sm:$0xff] %vm986_vm1, %v960_v42 }
 0x12d   :  { %v882_v43 = vpop.f32.mrf.mxu2  ;;  %v962_v44 = vpop.f32.mrf.mxu3 }
 0x12e   :  { %v883_v45 = vadd.f32 %v1663_v34, %v882_v43  ;;  %v724_v46 = vpop.f32.mrf.mxu0  ;;  %v804_v47 = vpop.f32.mrf.mxu1  ;;  %v963_v50 = vadd.f32 %v1663_v34, %v962_v44 }
 0x12f   :  { %v725_v48 = vadd.f32 %v1663_v34, %v724_v46  ;;  %v805_v49 = vadd.f32 %v1663_v34, %v804_v47 }
 0x130   :  { %1071 = vst.msk [vmem:[%s2417_s3 + $0x2a0] sm:$0xff] %vm986_vm1, %v883_v45 }
 0x131   :  { %1008 = vst.msk [vmem:[%s2417_s3 + $0xa8] sm:$0xff] %vm986_vm1, %v725_v48 }
 0x132   :  { %1040 = vst.msk [vmem:[%s2417_s3 + $0x1a8] sm:$0xff] %vm986_vm1, %v805_v49 }
 0x133   :  { %1103 = vst.msk [vmem:[%s2417_s3 + $0x3a0] sm:$0xff] %vm986_vm1, %v963_v50 }
 0x135   :  { %v884_v51 = vpop.f32.mrf.mxu2  ;;  %v964_v52 = vpop.f32.mrf.mxu3 }
 0x136   :  { %v885_v53 = vadd.f32 %v1663_v34, %v884_v51  ;;  %v727_v54 = vpop.f32.mrf.mxu0  ;;  %v807_v55 = vpop.f32.mrf.mxu1  ;;  %v965_v58 = vadd.f32 %v1663_v34, %v964_v52 }
 0x137   :  { %v728_v56 = vadd.f32 %v1663_v34, %v727_v54  ;;  %v808_v57 = vadd.f32 %v1663_v34, %v807_v55 }
 0x138   :  { %1072 = vst.msk [vmem:[%s2417_s3 + $0x2a8] sm:$0xff] %vm986_vm1, %v885_v53 }
 0x139   :  { %1009 = vst.msk [vmem:[%s2417_s3 + $0xb0] sm:$0xff] %vm986_vm1, %v728_v56 }
 0x13a   :  { %1041 = vst.msk [vmem:[%s2417_s3 + $0x1b0] sm:$0xff] %vm986_vm1, %v808_v57 }
 0x13b   :  { %1104 = vst.msk [vmem:[%s2417_s3 + $0x3a8] sm:$0xff] %vm986_vm1, %v965_v58 }
 0x13d   :  { %v887_v59 = vpop.f32.mrf.mxu2  ;;  %v967_v60 = vpop.f32.mrf.mxu3 }
 0x13e   :  { %v888_v61 = vadd.f32 %v1663_v34, %v887_v59  ;;  %v729_v62 = vpop.f32.mrf.mxu0  ;;  %v809_v63 = vpop.f32.mrf.mxu1  ;;  %v968_v2 = vadd.f32 %v1663_v34, %v967_v60 }
 0x13f   :  { %v730_v0 = vadd.f32 %v1663_v34, %v729_v62  ;;  %v810_v1 = vadd.f32 %v1663_v34, %v809_v63 }
 0x140   :  { %1073 = vst.msk [vmem:[%s2417_s3 + $0x2b0] sm:$0xff] %vm986_vm1, %v888_v61 }
 0x141   :  { %1010 = vst.msk [vmem:[%s2417_s3 + $0xb8] sm:$0xff] %vm986_vm1, %v730_v0 }
 0x142   :  { %1042 = vst.msk [vmem:[%s2417_s3 + $0x1b8] sm:$0xff] %vm986_vm1, %v810_v1 }
 0x143   :  { %1105 = vst.msk [vmem:[%s2417_s3 + $0x3b0] sm:$0xff] %vm986_vm1, %v968_v2 }
 0x145   :  { %v889_v3 = vpop.f32.mrf.mxu2  ;;  %v969_v4 = vpop.f32.mrf.mxu3 }
 0x146   :  { %v890_v5 = vadd.f32 %v1663_v34, %v889_v3  ;;  %v732_v6 = vpop.f32.mrf.mxu0  ;;  %v812_v7 = vpop.f32.mrf.mxu1  ;;  %v970_v10 = vadd.f32 %v1663_v34, %v969_v4 }
 0x147   :  { %v733_v8 = vadd.f32 %v1663_v34, %v732_v6  ;;  %v813_v9 = vadd.f32 %v1663_v34, %v812_v7 }
 0x148   :  { %1074 = vst.msk [vmem:[%s2417_s3 + $0x2b8] sm:$0xff] %vm986_vm1, %v890_v5 }
 0x149   :  { %1011 = vst.msk [vmem:[%s2417_s3 + $0xc0] sm:$0xff] %vm986_vm1, %v733_v8 }
 0x14a   :  { %1043 = vst.msk [vmem:[%s2417_s3 + $0x1c0] sm:$0xff] %vm986_vm1, %v813_v9 }
 0x14b   :  { %1106 = vst.msk [vmem:[%s2417_s3 + $0x3b8] sm:$0xff] %vm986_vm1, %v970_v10 }
 0x14d   :  { %v892_v11 = vpop.f32.mrf.mxu2  ;;  %v972_v12 = vpop.f32.mrf.mxu3 }
 0x14e   :  { %v893_v13 = vadd.f32 %v1663_v34, %v892_v11  ;;  %v734_v14 = vpop.f32.mrf.mxu0  ;;  %v814_v15 = vpop.f32.mrf.mxu1  ;;  %v973_v18 = vadd.f32 %v1663_v34, %v972_v12 }
 0x14f   :  { %v735_v16 = vadd.f32 %v1663_v34, %v734_v14  ;;  %v815_v17 = vadd.f32 %v1663_v34, %v814_v15 }
 0x150   :  { %1075 = vst.msk [vmem:[%s2417_s3 + $0x2c0] sm:$0xff] %vm986_vm1, %v893_v13 }
 0x151   :  { %1012 = vst.msk [vmem:[%s2417_s3 + $0xc8] sm:$0xff] %vm986_vm1, %v735_v16 }
 0x152   :  { %1044 = vst.msk [vmem:[%s2417_s3 + $0x1c8] sm:$0xff] %vm986_vm1, %v815_v17 }
 0x153   :  { %1107 = vst.msk [vmem:[%s2417_s3 + $0x3c0] sm:$0xff] %vm986_vm1, %v973_v18 }
 0x155   :  { %v894_v19 = vpop.f32.mrf.mxu2  ;;  %v974_v20 = vpop.f32.mrf.mxu3 }
 0x156   :  { %v895_v21 = vadd.f32 %v1663_v34, %v894_v19  ;;  %v737_v22 = vpop.f32.mrf.mxu0  ;;  %v817_v23 = vpop.f32.mrf.mxu1  ;;  %v975_v26 = vadd.f32 %v1663_v34, %v974_v20 }
 0x157   :  { %v738_v24 = vadd.f32 %v1663_v34, %v737_v22  ;;  %v818_v25 = vadd.f32 %v1663_v34, %v817_v23 }
 0x158   :  { %1076 = vst.msk [vmem:[%s2417_s3 + $0x2c8] sm:$0xff] %vm986_vm1, %v895_v21 }
 0x159   :  { %1013 = vst.msk [vmem:[%s2417_s3 + $0xd0] sm:$0xff] %vm986_vm1, %v738_v24 }
 0x15a   :  { %1045 = vst.msk [vmem:[%s2417_s3 + $0x1d0] sm:$0xff] %vm986_vm1, %v818_v25 }
 0x15b   :  { %1108 = vst.msk [vmem:[%s2417_s3 + $0x3c8] sm:$0xff] %vm986_vm1, %v975_v26 }
 0x15d   :  { %v897_v27 = vpop.f32.mrf.mxu2  ;;  %v977_v28 = vpop.f32.mrf.mxu3 }
 0x15e   :  { %v898_v29 = vadd.f32 %v1663_v34, %v897_v27  ;;  %v739_v30 = vpop.f32.mrf.mxu0  ;;  %v819_v31 = vpop.f32.mrf.mxu1  ;;  %v978_v35 = vadd.f32 %v1663_v34, %v977_v28 }
 0x15f   :  { %v740_v32 = vadd.f32 %v1663_v34, %v739_v30  ;;  %v820_v33 = vadd.f32 %v1663_v34, %v819_v31 }
 0x160   :  { %1077 = vst.msk [vmem:[%s2417_s3 + $0x2d0] sm:$0xff] %vm986_vm1, %v898_v29 }
 0x161   :  { %1014 = vst.msk [vmem:[%s2417_s3 + $0xd8] sm:$0xff] %vm986_vm1, %v740_v32 }
 0x162   :  { %1046 = vst.msk [vmem:[%s2417_s3 + $0x1d8] sm:$0xff] %vm986_vm1, %v820_v33 }
 0x163   :  { %1109 = vst.msk [vmem:[%s2417_s3 + $0x3d0] sm:$0xff] %vm986_vm1, %v978_v35 }
 0x165   :  { %v899_v36 = vpop.f32.mrf.mxu2  ;;  %v979_v37 = vpop.f32.mrf.mxu3 }
 0x166   :  { %v900_v38 = vadd.f32 %v1663_v34, %v899_v36  ;;  %v742_v39 = vpop.f32.mrf.mxu0  ;;  %v822_v40 = vpop.f32.mrf.mxu1  ;;  %v980_v43 = vadd.f32 %v1663_v34, %v979_v37 }
 0x167   :  { %v743_v41 = vadd.f32 %v1663_v34, %v742_v39  ;;  %v823_v42 = vadd.f32 %v1663_v34, %v822_v40 }
 0x168   :  { %1078 = vst.msk [vmem:[%s2417_s3 + $0x2d8] sm:$0xff] %vm986_vm1, %v900_v38 }
 0x169   :  { %1015 = vst.msk [vmem:[%s2417_s3 + $0xe0] sm:$0xff] %vm986_vm1, %v743_v41 }
 0x16a   :  { %1047 = vst.msk [vmem:[%s2417_s3 + $0x1e0] sm:$0xff] %vm986_vm1, %v823_v42 }
 0x16b   :  { %1110 = vst.msk [vmem:[%s2417_s3 + $0x3d8] sm:$0xff] %vm986_vm1, %v980_v43 }
 0x16d   :  { %v902_v44 = vpop.f32.mrf.mxu2  ;;  %v982_v45 = vpop.f32.mrf.mxu3 }
 0x16e   :  { %v903_v46 = vadd.f32 %v1663_v34, %v902_v44  ;;  %v744_v47 = vpop.f32.mrf.mxu0  ;;  %v824_v48 = vpop.f32.mrf.mxu1  ;;  %v983_v51 = vadd.f32 %v1663_v34, %v982_v45 }
 0x16f   :  { %v745_v49 = vadd.f32 %v1663_v34, %v744_v47  ;;  %v825_v50 = vadd.f32 %v1663_v34, %v824_v48 }
 0x170   :  { %1079 = vst.msk [vmem:[%s2417_s3 + $0x2e0] sm:$0xff] %vm986_vm1, %v903_v46 }
 0x171   :  { %1016 = vst.msk [vmem:[%s2417_s3 + $0xe8] sm:$0xff] %vm986_vm1, %v745_v49 }
 0x172   :  { %1048 = vst.msk [vmem:[%s2417_s3 + $0x1e8] sm:$0xff] %vm986_vm1, %v825_v50 }
 0x173   :  { %1111 = vst.msk [vmem:[%s2417_s3 + $0x3e0] sm:$0xff] %vm986_vm1, %v983_v51 }
 0x175   :  { %v904_v52 = vpop.f32.mrf.mxu2  ;;  %v984_v53 = vpop.f32.mrf.mxu3 }
 0x176   :  { %v905_v54 = vadd.f32 %v1663_v34, %v904_v52  ;;  %v747_v55 = vpop.f32.mrf.mxu0  ;;  %v827_v56 = vpop.f32.mrf.mxu1 }
 0x177   :  { %v748_v57 = vadd.f32 %v1663_v34, %v747_v55  ;;  %v828_v58 = vadd.f32 %v1663_v34, %v827_v56 }
 0x178   :  { %1080 = vst.msk [vmem:[%s2417_s3 + $0x2e8] sm:$0xff] %vm986_vm1, %v905_v54 }
 0x179   :  { %1017 = vst.msk [vmem:[%s2417_s3 + $0xf0] sm:$0xff] %vm986_vm1, %v748_v57 }
 0x17a   :  { %1049 = vst.msk [vmem:[%s2417_s3 + $0x1f0] sm:$0xff] %vm986_vm1, %v828_v58 }
 0x17d   :  { %v907_v59 = vpop.f32.mrf.mxu2 }
 0x17e   :  { %v908_v60 = vadd.f32 %v1663_v34, %v907_v59  ;;  %v749_v61 = vpop.f32.mrf.mxu0  ;;  %v829_v62 = vpop.f32.mrf.mxu1 }
 0x17f   :  { %v750_v63 = vadd.f32 %v1663_v34, %v749_v61  ;;  %v830_v0 = vadd.f32 %v1663_v34, %v829_v62 }
 0x180   :  { %1081 = vst.msk [vmem:[%s2417_s3 + $0x2f0] sm:$0xff] %vm986_vm1, %v908_v60 }
 0x181   :  { %1018 = vst.msk [vmem:[%s2417_s3 + $0xf8] sm:$0xff] %vm986_vm1, %v750_v63 }
 0x182   :  { %1050 = vst.msk [vmem:[%s2417_s3 + $0x1f8] sm:$0xff] %vm986_vm1, %v830_v0 }
 0x185   :  { %v909_v1 = vpop.f32.mrf.mxu2 }
 0x186   :  { %v910_v2 = vadd.f32 %v1663_v34, %v909_v1 }
 0x188   :  { %1082 = vst.msk [vmem:[%s2417_s3 + $0x2f8] sm:$0xff] %vm986_vm1, %v910_v2 }

</bundles_post_ra>
